<compile_context>
chip_gen: v5e
topology: v5e:2x2
jax: 0.10.0
libtpu: 0.0.40
codegen_flags: <defaults>
</compile_context>

<pallas_src>
import functools

import jax
import jax.numpy as jnp
from jax.experimental import pallas as pl
from jax.experimental.pallas import tpu as pltpu


def _round_up(x, m):
    return ((x + m - 1) // m) * m


def _fused_model_kernel(inv_hw, x_ref, wconv_ref, bconv_ref, wfc_ref, bfc_ref,
                        o_ref):
    """One block of TN samples per grid step.

    x_ref    : (TN, H*W, K_PAD)     bf16 im2col patches for TN samples
    wconv_ref: (K_PAD, COUT_PAD)    bf16 conv weight (zero-padded)
    bconv_ref: (1, COUT_PAD)        f32 conv bias (zero-padded)
    wfc_ref  : (COUT_PAD, NCLS_PAD) f32 classifier weight (zero-padded)
    bfc_ref  : (1, NCLS_PAD)        f32 classifier bias (-1e30 in padded cols)
    o_ref    : (TN, NCLS_PAD)       f32 softmax probabilities (padded cols ~0)
    """
    tn, hw, kpad = x_ref.shape
    cout = wconv_ref.shape[1]

    # Conv2d(3x3, pad=1) as one MXU matmul over all TN*HW im2col rows
    # (bf16 operands, f32 accumulation).
    x2d = x_ref[...].reshape(tn * hw, kpad)
    h = jnp.dot(x2d, wconv_ref[...],
                preferred_element_type=jnp.float32)              # (TN*HW, COUT)
    h = jnp.maximum(h + bconv_ref[...], 0.0)

    # Global average pool: per-sample sublane (XLU) reduction over the HW axis.
    pooled = jnp.sum(h.reshape(tn, hw, cout), axis=1) * inv_hw   # (TN, COUT)

    # Classifier head (tiny matmul — keep it in f32 for accurate logits).
    logits = jnp.dot(pooled, wfc_ref[...],
                     preferred_element_type=jnp.float32) + bfc_ref[...]

    # criterion.post_forward: numerically-stable softmax (EUP exp + reciprocal).
    m = jnp.max(logits, axis=-1, keepdims=True)
    e = jnp.exp(logits - m)
    inv = pl.reciprocal(jnp.sum(e, axis=-1, keepdims=True), approx=True)
    o_ref[...] = (e * inv).astype(o_ref.dtype)


def _im2col_3x3(x_nhwc):
    """Padded 3x3 patches. Returns (N, H*W, 9*Cin) with element order
    k = (ky*3 + kx)*Cin + ci, matching conv_w.reshape(9*Cin, Cout)."""
    n, h, w, c = x_nhwc.shape
    xp = jnp.pad(x_nhwc, ((0, 0), (1, 1), (1, 1), (0, 0)))
    slabs = [xp[:, ky:ky + h, kx:kx + w, :]
             for ky in range(3) for kx in range(3)]
    return jnp.concatenate(slabs, axis=-1).reshape(n, h * w, 9 * c)


@functools.partial(jax.jit, static_argnames=("n_classes",))
def model_forward(x_nchw, conv_w, conv_b, fc_w, fc_b, *, n_classes):
    """x_nchw: (N, Cin, H, W) float32 -> (N, n_classes) softmax probabilities."""
    n, cin, h, w = x_nchw.shape
    cout = conv_w.shape[-1]
    hw = h * w
    k = 9 * cin
    k_pad = _round_up(k, 128)
    cout_pad = _round_up(cout, 128)
    ncls_pad = _round_up(n_classes, 128)

    tn = min(n, 8)                      # samples per grid step
    n_pad = _round_up(n, tn)

    # --- wrapper glue: layout + lane padding (all static shapes) --------------
    x_nhwc = jnp.transpose(x_nchw, (0, 2, 3, 1)).astype(jnp.float32)
    patches = _im2col_3x3(x_nhwc)                               # (N, HW, K)
    patches = jnp.pad(patches, ((0, n_pad - n), (0, 0), (0, k_pad - k)))
    patches = patches.astype(jnp.bfloat16)                      # (N_PAD, HW, K_PAD)

    wconv = jnp.pad(conv_w.reshape(k, cout).astype(jnp.float32),
                    ((0, k_pad - k), (0, cout_pad - cout))).astype(jnp.bfloat16)
    bconv = jnp.pad(conv_b.astype(jnp.float32),
                    (0, cout_pad - cout)).reshape(1, cout_pad)
    wfc = jnp.pad(fc_w.astype(jnp.float32),
                  ((0, cout_pad - cout), (0, ncls_pad - n_classes)))
    # Padded class columns get a huge negative bias so softmax ignores them.
    bfc = jnp.concatenate(
        [fc_b.astype(jnp.float32).reshape(1, n_classes),
         jnp.full((1, ncls_pad - n_classes), -1e30, jnp.float32)], axis=1)

    flops = 2 * n_pad * hw * k_pad * cout_pad + 2 * n_pad * cout_pad * ncls_pad
    bytes_accessed = (patches.size * 2 + wconv.size * 2 + wfc.size * 4
                      + bconv.size * 4 + bfc.size * 4 + n_pad * ncls_pad * 4)
    cost = pl.CostEstimate(flops=flops,
                           transcendentals=n_pad * ncls_pad,
                           bytes_accessed=bytes_accessed)

    kernel = functools.partial(_fused_model_kernel, 1.0 / hw)

    out = pl.pallas_call(
        kernel,
        out_shape=jax.ShapeDtypeStruct((n_pad, ncls_pad), jnp.float32),
        grid=(n_pad // tn,),
        in_specs=[
            pl.BlockSpec((tn, hw, k_pad), lambda i: (i, 0, 0)),     # patches
            pl.BlockSpec((k_pad, cout_pad), lambda i: (0, 0)),      # conv W
            pl.BlockSpec((1, cout_pad), lambda i: (0, 0)),          # conv b
            pl.BlockSpec((cout_pad, ncls_pad), lambda i: (0, 0)),   # fc W
            pl.BlockSpec((1, ncls_pad), lambda i: (0, 0)),          # fc b
        ],
        out_specs=pl.BlockSpec((tn, ncls_pad), lambda i: (i, 0)),
        compiler_params=pltpu.CompilerParams(
            dimension_semantics=("parallel",)),
        cost_estimate=cost,
    )(patches, wconv, bconv, wfc, bfc)

    return out[:n, :n_classes]


def _reference_forward(x_nchw, conv_w, conv_b, fc_w, fc_b):
    """Pure-JAX f32 reference of the same forward pass."""
    n, cin, h, w = x_nchw.shape
    x_nhwc = jnp.transpose(x_nchw, (0, 2, 3, 1)).astype(jnp.float32)
    patches = _im2col_3x3(x_nhwc)                               # (N, HW, 9*Cin)
    hid = jnp.maximum(
        jnp.einsum("npk,kc->npc", patches, conv_w.reshape(9 * cin, -1))
        + conv_b, 0.0)
    pooled = jnp.mean(hid, axis=1)
    logits = pooled @ fc_w + fc_b
    return jax.nn.softmax(logits, axis=-1)


if __name__ == "__main__":
    # Small shapes consistent with an image-classification forward pass.
    N, CIN, H, W = 2, 4, 16, 16
    COUT = 32
    N_CLASSES = 10

    key = jax.random.PRNGKey(0)
    k_x, k_cw, k_cb, k_fw, k_fb = jax.random.split(key, 5)

    x = jax.random.normal(k_x, (N, CIN, H, W), dtype=jnp.float32)

    # Conv weight stored as (kh, kw, Cin, Cout) (transpose of PyTorch's
    # (Cout, Cin, kh, kw)), laid out for the im2col matmul.
    conv_w = jax.random.normal(k_cw, (3, 3, CIN, COUT), dtype=jnp.float32) * 0.1
    conv_b = jax.random.normal(k_cb, (COUT,), dtype=jnp.float32) * 0.01
    fc_w = jax.random.normal(k_fw, (COUT, N_CLASSES), dtype=jnp.float32) * 0.1
    fc_b = jax.random.normal(k_fb, (N_CLASSES,), dtype=jnp.float32) * 0.01

    out = model_forward(x, conv_w, conv_b, fc_w, fc_b, n_classes=N_CLASSES)
    out = jax.block_until_ready(out)

    assert out.shape == (N, N_CLASSES)
    # softmax rows must sum to 1 (approx reciprocal + bf16 conv -> loose tol)
    assert jnp.allclose(jnp.sum(out, axis=-1), 1.0, atol=1e-2)
    # match the pure-JAX f32 reference within bf16 tolerance
    ref = _reference_forward(x, conv_w, conv_b, fc_w, fc_b)
    assert jnp.allclose(out, ref, atol=2e-2), float(jnp.abs(out - ref).max())
    print("KERNEL_OK")
</pallas_src>

<mosaic_0001>
module attributes {stable_mosaic.version = 11 : i64} {
  func.func @_fused_model_kernel(%arg0: i32, %arg1: memref<2x256x128xbf16, #tpu.memory_space<vmem>>, %arg2: memref<128x128xbf16, #tpu.memory_space<vmem>>, %arg3: memref<1x128xf32, #tpu.memory_space<vmem>>, %arg4: memref<128x128xf32, #tpu.memory_space<vmem>>, %arg5: memref<1x128xf32, #tpu.memory_space<vmem>>, %arg6: memref<2x128xf32, #tpu.memory_space<vmem>>) attributes {dimension_semantics = [#tpu.dimension_semantics<parallel>], iteration_bounds = array<i64: 1>, scalar_prefetch = 0 : i64, scratch_operands = 0 : i64, tpu.core_type = #tpu.core_type<tc>, window_params = [{transform_indices = @transform_0, window_bounds = array<i64: 2, 256, 128>}, {pipeline_mode = #tpu.pipeline_mode<synchronous>, transform_indices = @transform_1, window_bounds = array<i64: 128, 128>}, {pipeline_mode = #tpu.pipeline_mode<synchronous>, transform_indices = @transform_2, window_bounds = array<i64: 1, 128>}, {pipeline_mode = #tpu.pipeline_mode<synchronous>, transform_indices = @transform_3, window_bounds = array<i64: 128, 128>}, {pipeline_mode = #tpu.pipeline_mode<synchronous>, transform_indices = @transform_4, window_bounds = array<i64: 1, 128>}, {transform_indices = @transform_5, window_bounds = array<i64: 2, 128>}]} {
    %c0 = arith.constant 0 : index
    %c0_0 = arith.constant 0 : index
    %c0_1 = arith.constant 0 : index
    %0 = vector.load %arg1[%c0, %c0_0, %c0_1] : memref<2x256x128xbf16, #tpu.memory_space<vmem>>, vector<2x256x128xbf16>
    %1 = vector.shape_cast %0 : vector<2x256x128xbf16> to vector<512x128xbf16>
    %c0_2 = arith.constant 0 : index
    %c0_3 = arith.constant 0 : index
    %2 = vector.load %arg2[%c0_2, %c0_3] : memref<128x128xbf16, #tpu.memory_space<vmem>>, vector<128x128xbf16>
    %cst = arith.constant dense<0.000000e+00> : vector<512x128xf32>
    %3 = tpu.matmul %1, %2, %cst {dimension_numbers = #tpu.dot_dimension_numbers<[1], [0], [0], [1], [0, 0, 1, 1], [], []>} : vector<512x128xbf16>, vector<128x128xbf16>, vector<512x128xf32> -> vector<512x128xf32>
    %c0_4 = arith.constant 0 : index
    %c0_5 = arith.constant 0 : index
    %4 = vector.load %arg3[%c0_4, %c0_5] : memref<1x128xf32, #tpu.memory_space<vmem>>, vector<1x128xf32>
    %5 = vector.broadcast %4 : vector<1x128xf32> to vector<512x128xf32>
    %6 = arith.addf %3, %5 : vector<512x128xf32>
    %cst_6 = arith.constant 0.000000e+00 : f32
    %7 = vector.broadcast %cst_6 : f32 to vector<512x128xf32>
    %8 = arith.maximumf %6, %7 : vector<512x128xf32>
    %9 = vector.shape_cast %8 : vector<512x128xf32> to vector<2x256x128xf32>
    %cst_7 = arith.constant dense<0.000000e+00> : vector<2x128xf32>
    %10 = vector.multi_reduction <add>, %9, %cst_7 [1] : vector<2x256x128xf32> to vector<2x128xf32>
    %cst_8 = arith.constant 3.906250e-03 : f32
    %11 = vector.broadcast %cst_8 : f32 to vector<2x128xf32>
    %12 = arith.mulf %10, %11 : vector<2x128xf32>
    %c0_9 = arith.constant 0 : index
    %c0_10 = arith.constant 0 : index
    %13 = vector.load %arg4[%c0_9, %c0_10] : memref<128x128xf32, #tpu.memory_space<vmem>>, vector<128x128xf32>
    %cst_11 = arith.constant dense<0.000000e+00> : vector<2x128xf32>
    %14 = tpu.matmul %12, %13, %cst_11 {dimension_numbers = #tpu.dot_dimension_numbers<[1], [0], [0], [1], [0, 0, 1, 1], [], []>} : vector<2x128xf32>, vector<128x128xf32>, vector<2x128xf32> -> vector<2x128xf32>
    %c0_12 = arith.constant 0 : index
    %c0_13 = arith.constant 0 : index
    %15 = vector.load %arg5[%c0_12, %c0_13] : memref<1x128xf32, #tpu.memory_space<vmem>>, vector<1x128xf32>
    %16 = vector.broadcast %15 : vector<1x128xf32> to vector<2x128xf32>
    %17 = arith.addf %14, %16 : vector<2x128xf32>
    %cst_14 = arith.constant dense<0xFF800000> : vector<2xf32>
    %18 = vector.multi_reduction <maximumf>, %17, %cst_14 [1] : vector<2x128xf32> to vector<2xf32>
    %19 = vector.shape_cast %18 : vector<2xf32> to vector<2x1xf32>
    %20 = vector.broadcast %19 : vector<2x1xf32> to vector<2x128xf32>
    %21 = arith.subf %17, %20 : vector<2x128xf32>
    %22 = math.exp %21 : vector<2x128xf32>
    %cst_15 = arith.constant dense<0.000000e+00> : vector<2xf32>
    %23 = vector.multi_reduction <add>, %22, %cst_15 [1] : vector<2x128xf32> to vector<2xf32>
    %24 = vector.shape_cast %23 : vector<2xf32> to vector<2x1xf32>
    %25 = tpu.reciprocal %24 {approx = true} : vector<2x1xf32> -> vector<2x1xf32>
    %26 = vector.broadcast %25 : vector<2x1xf32> to vector<2x128xf32>
    %27 = arith.mulf %22, %26 : vector<2x128xf32>
    %c0_16 = arith.constant 0 : index
    %c0_17 = arith.constant 0 : index
    %28 = vector.load %arg6[%c0_16, %c0_17] : memref<2x128xf32, #tpu.memory_space<vmem>>, vector<2x128xf32>
    tpu.vector_store %arg6[%c0_16, %c0_17], %27 {strides = array<i32>} : memref<2x128xf32, #tpu.memory_space<vmem>>, vector<2x128xf32>,
    return
  }
  func.func @transform_0(%arg0: i32) -> (i32, i32, i32) {
    %c0_i32 = arith.constant 0 : i32
    %c0_i32_0 = arith.constant 0 : i32
    %c0_i32_1 = arith.constant 0 : i32
    return %arg0, %c0_i32, %c0_i32_0 : i32, i32, i32
  }
  func.func @transform_1(%arg0: i32) -> (i32, i32) {
    %c0_i32 = arith.constant 0 : i32
    %c0_i32_0 = arith.constant 0 : i32
    %c0_i32_1 = arith.constant 0 : i32
    return %c0_i32, %c0_i32_0 : i32, i32
  }
  func.func @transform_2(%arg0: i32) -> (i32, i32) {
    %c0_i32 = arith.constant 0 : i32
    %c0_i32_0 = arith.constant 0 : i32
    %c0_i32_1 = arith.constant 0 : i32
    return %c0_i32, %c0_i32_0 : i32, i32
  }
  func.func @transform_3(%arg0: i32) -> (i32, i32) {
    %c0_i32 = arith.constant 0 : i32
    %c0_i32_0 = arith.constant 0 : i32
    %c0_i32_1 = arith.constant 0 : i32
    return %c0_i32, %c0_i32_0 : i32, i32
  }
  func.func @transform_4(%arg0: i32) -> (i32, i32) {
    %c0_i32 = arith.constant 0 : i32
    %c0_i32_0 = arith.constant 0 : i32
    %c0_i32_1 = arith.constant 0 : i32
    return %c0_i32, %c0_i32_0 : i32, i32
  }
  func.func @transform_5(%arg0: i32) -> (i32, i32) {
    %c0_i32 = arith.constant 0 : i32
    %c0_i32_0 = arith.constant 0 : i32
    return %arg0, %c0_i32 : i32, i32
  }
}

</mosaic_0001>

<bundles_post_ra>
// kernel: model_forward.1
= control target key start
LH: loop header
LB: loop body
LE: loop exit
PB: predicated region body
PF: predicated region fallthrough
CT: control target
= control target key end

     0   :  { %s1364_s0 = inlined_call_operand.vmem [shape: bf16[2,256,128], index: 0, kind: input, shape index: {}]   ;;  %s1365_s1 = inlined_call_operand.vmem [shape: bf16[128,128], index: 1, kind: input, shape index: {}]   ;;  %s1366_s2 = inlined_call_operand.vmem [shape: f32[1,128], index: 2, kind: input, shape index: {}]   ;;  %s1367_s3 = inlined_call_operand.vmem [shape: f32[128,128], index: 3, kind: input, shape index: {}]   ;;  %s1368_s4 = inlined_call_operand.vmem [shape: f32[1,128], index: 4, kind: input, shape index: {}]   ;;  %s1369_s5 = inlined_call_operand.hbm [shape: f32[2,128], index: 5, kind: output, shape index: {}]  }
   0x1   :  { %v927_v0 = vld [vmem:[%s1365_s1 + $0x38] sm:$0xff]  ;;  %v926_v1 = vld [vmem:[%s1365_s1 + $0x30] sm:$0xff] }
   0x2   :  { %345 = vmatpush.bf16.msra.mxu0 %v927_v0  ;;  %929 = vmatpush.bf16.msra.mxu2 %v927_v0 }
   0x3   :  { %930 = vmatpush.bf16.msra.mxu3 %v927_v0  ;;  %928 = vmatpush.bf16.msra.mxu1 %v927_v0 }
   0x4   :  { %10 = vsyncpa [#allocation3], 0  ;;  %v925_v2 = vld [vmem:[%s1365_s1 + $0x28] sm:$0xff]  ;;  %v924_v3 = vld [vmem:[%s1365_s1 + $0x20] sm:$0xff]  ;;  %vm676_vm0 = vcmask 1041409   ;;  %vm699_vm1 = vcmask 1041408  }
   0x5   :  { %v923_v4 = vld [vmem:[%s1365_s1 + $0x18] sm:$0xff]  ;;  %v922_v5 = vld [vmem:[%s1365_s1 + $0x10] sm:$0xff]  ;;  %v921_v6 = vld [vmem:[%s1365_s1 + $0x8] sm:$0xff]  ;;  %s985_s25 = smov [#allocation2]  }
   0x6   :  { %346 = vmatpush.bf16.msra.mxu0 %v926_v1  ;;  %932 = vmatpush.bf16.msra.mxu2 %v926_v1  ;;  %v920_v7 = vld [vmem:[%s1365_s1] sm:$0xff]  ;;  %v902_v9 = vld [vmem:[%s1364_s0 + $0x70] sm:$0xff]  ;;  %v911_v10 = vld [vmem:[%s1364_s0 + $0xb8] sm:$0xff]  ;;  %s717_s26 = sshll.u32 %s985_s25, 4  ;;  %s718_s26 = int_to_ptr.vmem [resolvable:$true] %s717_s26 }
   0x7   :  { %933 = vmatpush.bf16.msra.mxu3 %v926_v1  ;;  %931 = vmatpush.bf16.msra.mxu1 %v926_v1  ;;  %v888_v8 = vld [vmem:[%s1364_s0] sm:$0xff]  ;;  %v889_v11 = vld [vmem:[%s1364_s0 + $0x8] sm:$0xff]  ;;  %v903_v12 = vld [vmem:[%s1364_s0 + $0x78] sm:$0xff] }
   0x8   :  { %v912_v13 = vld [vmem:[%s1364_s0 + $0xc0] sm:$0xff]  ;;  %v890_v15 = vld [vmem:[%s1364_s0 + $0x10] sm:$0xff]  ;;  %v913_v17 = vld [vmem:[%s1364_s0 + $0xc8] sm:$0xff] }
   0x9   :  { %v896_v14 = vld [vmem:[%s1364_s0 + $0x40] sm:$0xff]  ;;  %v897_v18 = vld [vmem:[%s1364_s0 + $0x48] sm:$0xff]  ;;  %v891_v19 = vld [vmem:[%s1364_s0 + $0x18] sm:$0xff] }
   0xa   :  { %347 = vmatpush.bf16.msra.mxu0 %v925_v2  ;;  %935 = vmatpush.bf16.msra.mxu2 %v925_v2  ;;  %v904_v16 = vld [vmem:[%s1364_s0 + $0x80] sm:$0xff]  ;;  %v905_v20 = vld [vmem:[%s1364_s0 + $0x88] sm:$0xff]  ;;  %v914_v21 = vld [vmem:[%s1364_s0 + $0xd0] sm:$0xff] }
   0xb   :  { %936 = vmatpush.bf16.msra.mxu3 %v925_v2  ;;  %934 = vmatpush.bf16.msra.mxu1 %v925_v2  ;;  %v898_v22 = vld [vmem:[%s1364_s0 + $0x50] sm:$0xff]  ;;  %v892_v23 = vld [vmem:[%s1364_s0 + $0x20] sm:$0xff]  ;;  %v915_v25 = vld [vmem:[%s1364_s0 + $0xd8] sm:$0xff] }
   0xc   :  { %v906_v24 = vld [vmem:[%s1364_s0 + $0x90] sm:$0xff]  ;;  %v899_v26 = vld [vmem:[%s1364_s0 + $0x58] sm:$0xff]  ;;  %v893_v27 = vld [vmem:[%s1364_s0 + $0x28] sm:$0xff] }
   0xd   :  { %v907_v28 = vld [vmem:[%s1364_s0 + $0x98] sm:$0xff]  ;;  %v916_v29 = vld [vmem:[%s1364_s0 + $0xe0] sm:$0xff]  ;;  %v894_v31 = vld [vmem:[%s1364_s0 + $0x30] sm:$0xff] }
   0xe   :  { %348 = vmatpush.bf16.msra.mxu0 %v924_v3  ;;  %938 = vmatpush.bf16.msra.mxu2 %v924_v3  ;;  %v900_v30 = vld [vmem:[%s1364_s0 + $0x60] sm:$0xff]  ;;  %v917_v33 = vld [vmem:[%s1364_s0 + $0xe8] sm:$0xff]  ;;  %v895_v35 = vld [vmem:[%s1364_s0 + $0x38] sm:$0xff] }
   0xf   :  { %939 = vmatpush.bf16.msra.mxu3 %v924_v3  ;;  %937 = vmatpush.bf16.msra.mxu1 %v924_v3  ;;  %v908_v32 = vld [vmem:[%s1364_s0 + $0xa0] sm:$0xff]  ;;  %v901_v34 = vld [vmem:[%s1364_s0 + $0x68] sm:$0xff]  ;;  %v918_v37 = vld [vmem:[%s1364_s0 + $0xf0] sm:$0xff] }
  0x10   :  { %v909_v36 = vld [vmem:[%s1364_s0 + $0xa8] sm:$0xff]  ;;  %v910_v38 = vld [vmem:[%s1364_s0 + $0xb0] sm:$0xff]  ;;  %v919_v40 = vld [vmem:[%s1364_s0 + $0xf8] sm:$0xff] }
  0x11   :  { %v1139_v41 = vld [vmem:[%s1366_s2] ss:$0 sm:$0xff] }
  0x12   :  { %349 = vmatpush.bf16.msra.mxu0 %v923_v4  ;;  %941 = vmatpush.bf16.msra.mxu2 %v923_v4 }
  0x13   :  { %942 = vmatpush.bf16.msra.mxu3 %v923_v4  ;;  %940 = vmatpush.bf16.msra.mxu1 %v923_v4 }
  0x16   :  { %350 = vmatpush.bf16.msra.mxu0 %v922_v5  ;;  %944 = vmatpush.bf16.msra.mxu2 %v922_v5 }
  0x17   :  { %945 = vmatpush.bf16.msra.mxu3 %v922_v5  ;;  %943 = vmatpush.bf16.msra.mxu1 %v922_v5 }
  0x1a   :  { %351 = vmatpush.bf16.msra.mxu0 %v921_v6  ;;  %947 = vmatpush.bf16.msra.mxu2 %v921_v6 }
  0x1b   :  { %948 = vmatpush.bf16.msra.mxu3 %v921_v6  ;;  %946 = vmatpush.bf16.msra.mxu1 %v921_v6 }
  0x1e   :  { %352 = vmatpush.bf16.msra.mxu0 %v920_v7  ;;  %950 = vmatpush.bf16.msra.mxu2 %v920_v7 }
  0x1f   :  { %951 = vmatpush.bf16.msra.mxu3 %v920_v7  ;;  %949 = vmatpush.bf16.msra.mxu1 %v920_v7 }
  0x21   :  { %353 = vmatmul.bf16.vlgmr.msra.gmra.mxu0 %v888_v8  ;;  %423 = vmatmul.bf16.vlgmr.msra.gmra.mxu2 %v902_v9 }
  0x22   :  { %468 = vmatmul.bf16.vlgmr.msra.gmra.mxu3 %v911_v10  ;;  %393 = vmatmul.bf16.vlgmr.msra.gmra.mxu1 %v896_v14 }
  0x31   :  { %358 = vmatmul.bf16.gmra.mxu0 %v889_v11  ;;  %428 = vmatmul.bf16.gmra.mxu2 %v903_v12 }
  0x32   :  { %473 = vmatmul.bf16.gmra.mxu3 %v912_v13  ;;  %398 = vmatmul.bf16.gmra.mxu1 %v897_v18 }
  0x41   :  { %363 = vmatmul.bf16.gmra.mxu0 %v890_v15  ;;  %433 = vmatmul.bf16.gmra.mxu2 %v904_v16 }
  0x42   :  { %478 = vmatmul.bf16.gmra.mxu3 %v913_v17  ;;  %403 = vmatmul.bf16.gmra.mxu1 %v898_v22 }
  0x51   :  { %368 = vmatmul.bf16.gmra.mxu0 %v891_v19  ;;  %438 = vmatmul.bf16.gmra.mxu2 %v905_v20 }
  0x52   :  { %483 = vmatmul.bf16.gmra.mxu3 %v914_v21  ;;  %408 = vmatmul.bf16.gmra.mxu1 %v899_v26 }
  0x61   :  { %373 = vmatmul.bf16.gmra.mxu0 %v892_v23  ;;  %443 = vmatmul.bf16.gmra.mxu2 %v906_v24 }
  0x62   :  { %488 = vmatmul.bf16.gmra.mxu3 %v915_v25  ;;  %413 = vmatmul.bf16.gmra.mxu1 %v900_v30 }
  0x71   :  { %378 = vmatmul.bf16.gmra.mxu0 %v893_v27  ;;  %448 = vmatmul.bf16.gmra.mxu2 %v907_v28 }
  0x72   :  { %493 = vmatmul.bf16.gmra.mxu3 %v916_v29  ;;  %418 = vmatmul.bf16.gmra.mxu1 %v901_v34 }
  0x81   :  { %383 = vmatmul.bf16.gmra.mxu0 %v894_v31  ;;  %453 = vmatmul.bf16.gmra.mxu2 %v908_v32  ;;  %v669_v31 = vld [vmem:[%s1367_s3 + $0x78] sm:$0xff] }
  0x82   :  { %498 = vmatmul.bf16.gmra.mxu3 %v917_v33  ;;  %679 = vmatpush.msrb.mxu1 %v669_v31  ;;  %v664_v31 = vld [vmem:[%s1367_s3 + $0x50] sm:$0xff] }
  0x91   :  { %388 = vmatmul.bf16.gmra.mxu0 %v895_v35  ;;  %458 = vmatmul.bf16.gmra.mxu2 %v909_v36  ;;  %v668_v35 = vld [vmem:[%s1367_s3 + $0x70] sm:$0xff] }
  0x92   :  { %503 = vmatmul.bf16.gmra.mxu3 %v918_v37  ;;  %680 = vmatpush.msrb.mxu1 %v668_v35  ;;  %v667_v37 = vld [vmem:[%s1367_s3 + $0x68] sm:$0xff] }
  0x94   :  { %681 = vmatpush.msrb.mxu1 %v667_v37 }
  0x9e   :  { %v354_v39 = vpop.f32.mrf.mxu0 }
  0x9f   :  { %v355_v42 = vadd.f32 %v1139_v41, %v354_v39  ;;  %v1157_v61 = vpop.f32.mrf.mxu1 }
  0xa1   :  { %463 = vmatmul.bf16.gmra.mxu2 %v910_v38  ;;  %v514_v46 = vmax.f32 %v355_v42, 0.0 }
  0xa2   :  { %508 = vmatmul.bf16.gmra.mxu3 %v919_v40 }
  0xa4   :  { %v1142_v43 = vpop.f32.mrf.mxu2 }
  0xa5   :  { %v1144_v44 = vpop.f32.mrf.mxu3 }
  0xa6   :  { %v356_v45 = vpop.f32.mrf.mxu0 }
  0xa7   :  { %v357_v47 = vadd.f32 %v1139_v41, %v356_v45  ;;  %v1164_v6 = vpop.f32.mrf.mxu1 }
  0xa9   :  { %v515_v48 = vmax.f32 %v357_v47, 0.0 }
  0xab   :  { %v578_v49 = vadd.f32 %v515_v48, %v514_v46 }
  0xac   :  { %v1147_v50 = vpop.f32.mrf.mxu2 }
  0xad   :  { %v1149_v51 = vpop.f32.mrf.mxu3 }
  0xae   :  { %v359_v52 = vpop.f32.mrf.mxu0 }
  0xaf   :  { %v360_v53 = vadd.f32 %v1139_v41, %v359_v52  ;;  %v1170_v13 = vpop.f32.mrf.mxu1 }
  0xb1   :  { %v516_v54 = vmax.f32 %v360_v53, 0.0 }
  0xb3   :  { %v579_v55 = vadd.f32 %v578_v49, %v516_v54 }
  0xb4   :  { %v1152_v56 = vpop.f32.mrf.mxu2 }
  0xb5   :  { %v1154_v58 = vpop.f32.mrf.mxu3 }
  0xb6   :  { %v361_v57 = vpop.f32.mrf.mxu0 }
  0xb7   :  { %v362_v59 = vadd.f32 %v1139_v41, %v361_v57  ;;  %v1175_v22 = vpop.f32.mrf.mxu1 }
  0xb9   :  { %v517_v60 = vmax.f32 %v362_v59, 0.0 }
  0xbb   :  { %v580_v62 = vadd.f32 %v579_v55, %v517_v60 }
  0xbc   :  { %v1159_v63 = vpop.f32.mrf.mxu2 }
  0xbd   :  { %v1162_v2 = vpop.f32.mrf.mxu3 }
  0xbe   :  { %v364_v0 = vpop.f32.mrf.mxu0 }
  0xbf   :  { %v365_v1 = vadd.f32 %v1139_v41, %v364_v0  ;;  %v1183_v27 = vpop.f32.mrf.mxu1 }
  0xc1   :  { %v518_v3 = vmax.f32 %v365_v1, 0.0 }
  0xc3   :  { %v581_v4 = vadd.f32 %v580_v62, %v518_v3 }
  0xc4   :  { %v434_v5 = vpop.f32.mrf.mxu2 }
  0xc5   :  { %v1166_v8 = vpop.f32.mrf.mxu3  ;;  %v435_v9 = vadd.f32 %v1139_v41, %v434_v5 }
  0xc6   :  { %v366_v7 = vpop.f32.mrf.mxu0 }
  0xc7   :  { %v546_v14 = vmax.f32 %v435_v9, 0.0  ;;  %v1194_v33 = vpop.f32.mrf.mxu1  ;;  %v367_v47 = vadd.f32 %v1139_v41, %v366_v7 }
  0xc9   :  { %v519_v52 = vmax.f32 %v367_v47, 0.0 }
  0xcb   :  { %v582_v62 = vadd.f32 %v581_v4, %v519_v52  ;;  %v666_v4 = vld [vmem:[%s1367_s3 + $0x60] sm:$0xff] }
  0xcc   :  { %v436_v10 = vpop.f32.mrf.mxu2  ;;  %682 = vmatpush.msrb.mxu1 %v666_v4 }
  0xcd   :  { %v437_v11 = vadd.f32 %v1139_v41, %v436_v10  ;;  %v1172_v18 = vpop.f32.mrf.mxu3 }
  0xce   :  { %v369_v12 = vpop.f32.mrf.mxu0 }
  0xcf   :  { %v547_v15 = vmax.f32 %v437_v11, 0.0  ;;  %v1206_v40 = vpop.f32.mrf.mxu1  ;;  %v370_v49 = vadd.f32 %v1139_v41, %v369_v12 }
  0xd1   :  { %v615_v16 = vadd.f32 %v547_v15, %v546_v14  ;;  %v520_v55 = vmax.f32 %v370_v49, 0.0 }
  0xd3   :  { %v583_v3 = vadd.f32 %v582_v62, %v520_v55 }
  0xd4   :  { %v439_v17 = vpop.f32.mrf.mxu2 }
  0xd5   :  { %v440_v19 = vadd.f32 %v1139_v41, %v439_v17  ;;  %v1181_v26 = vpop.f32.mrf.mxu3 }
  0xd6   :  { %v371_v20 = vpop.f32.mrf.mxu0 }
  0xd7   :  { %v548_v21 = vmax.f32 %v440_v19, 0.0  ;;  %v1213_v48 = vpop.f32.mrf.mxu1  ;;  %v372_v53 = vadd.f32 %v1139_v41, %v371_v20 }
  0xd9   :  { %v1177_v23 = vadd.f32 %v615_v16, %v548_v21  ;;  %v521_v0 = vmax.f32 %v372_v53, 0.0 }
  0xdb   :  { %v584_v10 = vadd.f32 %v583_v3, %v521_v0  ;;  %v395_v0 = vadd.f32 %v1139_v41, %v1157_v61 }
  0xdc   :  { %v1179_v24 = vpop.f32.mrf.mxu2 }
  0xdd   :  { %v1187_v30 = vpop.f32.mrf.mxu3  ;;  %v442_v55 = vadd.f32 %v1139_v41, %v1179_v24  ;;  %v530_v61 = vmax.f32 %v395_v0, 0.0 }
  0xde   :  { %v374_v25 = vpop.f32.mrf.mxu0 }
  0xdf   :  { %v375_v57 = vadd.f32 %v1139_v41, %v374_v25  ;;  %v1224_v9 = vpop.f32.mrf.mxu1 }
  0xe1   :  { %v522_v5 = vmax.f32 %v375_v57, 0.0 }
  0xe3   :  { %v585_v15 = vadd.f32 %v584_v10, %v522_v5  ;;  %v549_v10 = vmax.f32 %v442_v55, 0.0 }
  0xe4   :  { %v1185_v28 = vpop.f32.mrf.mxu2 }
  0xe5   :  { %v1199_v36 = vpop.f32.mrf.mxu3 }
  0xe6   :  { %v376_v29 = vpop.f32.mrf.mxu0 }
  0xe7   :  { %v377_v1 = vadd.f32 %v1139_v41, %v376_v29  ;;  %v665_v29 = vld [vmem:[%s1367_s3 + $0x58] sm:$0xff]  ;;  %v416_v53 = vpop.f32.mrf.mxu1 }
  0xe8   :  { %683 = vmatpush.msrb.mxu1 %v665_v29 }
  0xe9   :  { %v523_v11 = vmax.f32 %v377_v1, 0.0  ;;  %v445_v1 = vadd.f32 %v1139_v41, %v1185_v28 }
  0xea   :  { %684 = vmatpush.msrb.mxu1 %v664_v31  ;;  %v405_v31 = vadd.f32 %v1139_v41, %v1183_v27  ;;  %v410_v27 = vadd.f32 %v1139_v41, %v1206_v40 }
  0xeb   :  { %v586_v20 = vadd.f32 %v585_v15, %v523_v11  ;;  %v400_v15 = vadd.f32 %v1139_v41, %v1170_v13 }
  0xec   :  { %v1192_v32 = vpop.f32.mrf.mxu2 }
  0xed   :  { %v1210_v45 = vpop.f32.mrf.mxu3  ;;  %v447_v11 = vadd.f32 %v1139_v41, %v1192_v32  ;;  %v617_v32 = vadd.f32 %v1177_v23, %v549_v10  ;;  %v532_v29 = vmax.f32 %v400_v15, 0.0  ;;  %v407_v23 = vadd.f32 %v1139_v41, %v1194_v33 }
  0xee   :  { %v379_v34 = vpop.f32.mrf.mxu0  ;;  %v415_v33 = vadd.f32 %v1139_v41, %v1224_v9 }
  0xef   :  { %v380_v7 = vadd.f32 %v1139_v41, %v379_v34 }
  0xf1   :  { %v524_v16 = vmax.f32 %v380_v7, 0.0  ;;  %v397_v7 = vadd.f32 %v1139_v41, %v1164_v6  ;;  %v402_v6 = vadd.f32 %v1139_v41, %v1175_v22 }
  0xf3   :  { %v587_v35 = vadd.f32 %v586_v20, %v524_v16  ;;  %v533_v22 = vmax.f32 %v402_v6, 0.0 }
  0xf4   :  { %v1204_v38 = vpop.f32.mrf.mxu2 }
  0xf5   :  { %v1220_v60 = vpop.f32.mrf.mxu3  ;;  %v450_v28 = vadd.f32 %v1139_v41, %v1204_v38 }
  0xf6   :  { %v381_v39 = vpop.f32.mrf.mxu0 }
  0xf7   :  { %v382_v12 = vadd.f32 %v1139_v41, %v381_v39  ;;  %v552_v38 = vmax.f32 %v450_v28, 0.0  ;;  %v538_v28 = vmax.f32 %v415_v33, 0.0 }
  0xf9   :  { %v525_v21 = vmax.f32 %v382_v12, 0.0 }
  0xfb   :  { %v588_v47 = vadd.f32 %v587_v35, %v525_v21  ;;  %v551_v21 = vmax.f32 %v447_v11, 0.0  ;;  %v419_v35 = vpop.f32.mrf.mxu1 }
  0xfc   :  { %v1208_v42 = vpop.f32.mrf.mxu2 }
  0xfd   :  { %v1238_v34 = vpop.f32.mrf.mxu3 }
  0xfe   :  { %v384_v46 = vpop.f32.mrf.mxu0 }
  0xff   :  { %v385_v17 = vadd.f32 %v1139_v41, %v384_v46  ;;  %v663_v46 = vld [vmem:[%s1367_s3 + $0x48] sm:$0xff] }
 0x100   :  { %685 = vmatpush.msrb.mxu1 %v663_v46 }
 0x101   :  { %v526_v37 = vmax.f32 %v385_v17, 0.0  ;;  %v550_v17 = vmax.f32 %v445_v1, 0.0 }
 0x103   :  { %v589_v57 = vadd.f32 %v588_v47, %v526_v37  ;;  %v618_v37 = vadd.f32 %v617_v32, %v550_v17  ;;  %v420_v32 = vadd.f32 %v1139_v41, %v419_v35  ;;  %v472_v35 = vadd.f32 %v1139_v41, %v1149_v51 }
 0x104   :  { %v1217_v54 = vpop.f32.mrf.mxu2  ;;  %v475_v51 = vadd.f32 %v1139_v41, %v1154_v58  ;;  %v659_v58 = vld [vmem:[%s1367_s3 + $0x28] sm:$0xff] }
 0x105   :  { %v1257_v16 = vpop.f32.mrf.mxu3  ;;  %v619_v47 = vadd.f32 %v618_v37, %v551_v21 }
 0x106   :  { %v386_v59 = vpop.f32.mrf.mxu0 }
 0x107   :  { %v387_v25 = vadd.f32 %v1139_v41, %v386_v59 }
 0x109   :  { %v527_v49 = vmax.f32 %v387_v25, 0.0  ;;  %v452_v25 = vadd.f32 %v1139_v41, %v1208_v42 }
 0x10b   :  { %v590_v3 = vadd.f32 %v589_v57, %v527_v49  ;;  %v553_v49 = vmax.f32 %v452_v25, 0.0  ;;  %v534_v57 = vmax.f32 %v405_v31, 0.0 }
 0x10c   :  { %v456_v14 = vpop.f32.mrf.mxu2 }
 0x10d   :  { %v457_v42 = vadd.f32 %v1139_v41, %v456_v14 }
 0x10e   :  { %v389_v19 = vpop.f32.mrf.mxu0 }
 0x10f   :  { %v390_v39 = vadd.f32 %v1139_v41, %v389_v19  ;;  %v531_v19 = vmax.f32 %v397_v7, 0.0  ;;  %v1280_v7 = vpop.f32.mrf.mxu3  ;;  %v555_v10 = vmax.f32 %v457_v42, 0.0 }
 0x111   :  { %v528_v59 = vmax.f32 %v390_v39, 0.0  ;;  %v455_v39 = vadd.f32 %v1139_v41, %v1217_v54  ;;  %v535_v54 = vmax.f32 %v407_v23, 0.0 }
 0x113   :  { %v591_v24 = vadd.f32 %v590_v3, %v528_v59  ;;  %v620_v59 = vadd.f32 %v619_v47, %v552_v38  ;;  %v412_v3 = vadd.f32 %v1139_v41, %v1213_v48 }
 0x114   :  { %v459_v52 = vpop.f32.mrf.mxu2 }
 0x115   :  { %v460_v0 = vadd.f32 %v1139_v41, %v459_v52  ;;  %v621_v14 = vadd.f32 %v620_v59, %v553_v49  ;;  %v537_v48 = vmax.f32 %v412_v3, 0.0  ;;  %v561_v3 = vmax.f32 %v472_v35, 0.0 }
 0x116   :  { %v391_v62 = vpop.f32.mrf.mxu0 }
 0x117   :  { %v392_v5 = vadd.f32 %v1139_v41, %v391_v62  ;;  %v554_v62 = vmax.f32 %v455_v39, 0.0  ;;  %v556_v15 = vmax.f32 %v460_v0, 0.0  ;;  %v540_v39 = vmax.f32 %v420_v32, 0.0  ;;  %v1294_v23 = vpop.f32.mrf.mxu3  ;;  %v660_v0 = vld [vmem:[%s1367_s3 + $0x30] sm:$0xff] }
 0x119   :  { %v529_v12 = vmax.f32 %v392_v5, 0.0  ;;  %v622_v52 = vadd.f32 %v621_v14, %v554_v62 }
 0x11b   :  { %v592_v4 = vadd.f32 %v591_v24, %v529_v12  ;;  %v536_v24 = vmax.f32 %v410_v27, 0.0  ;;  %v417_v12 = vadd.f32 %v1139_v41, %v416_v53  ;;  %v623_v9 = vadd.f32 %v622_v52, %v555_v10 }
 0x11c   :  { %v461_v20 = vpop.f32.mrf.mxu2  ;;  %v470_v53 = vadd.f32 %v1139_v41, %v1144_v44  ;;  %v662_v44 = vld [vmem:[%s1367_s3 + $0x40] sm:$0xff]  ;;  %v432_v10 = vadd.f32 %v1139_v41, %v1159_v63  ;;  %v482_v52 = vadd.f32 %v1139_v41, %v1172_v18  ;;  %v485_v63 = vadd.f32 %v1139_v41, %v1181_v26  ;;  %v657_v26 = vld [vmem:[%s1367_s3 + $0x18] sm:$0xff] }
 0x11d   :  { %v593_v13 = vadd.f32 %v592_v4, %v530_v61  ;;  %v462_v40 = vadd.f32 %v1139_v41, %v461_v20  ;;  %v421_v4 = vpop.f32.mrf.mxu1  ;;  %v539_v21 = vmax.f32 %v417_v12, 0.0  ;;  %v624_v25 = vadd.f32 %v623_v9, %v556_v15  ;;  %686 = vmatpush.msrb.mxu1 %v662_v44  ;;  %v658_v18 = vld [vmem:[%s1367_s3 + $0x20] sm:$0xff] }
 0x11e   :  { %v560_v27 = vmax.f32 %v470_v53, 0.0 }
 0x11f   :  { %v594_v46 = vadd.f32 %v593_v13, %v531_v19  ;;  %v557_v6 = vmax.f32 %v462_v40, 0.0 }
 0x121   :  { %v595_v55 = vadd.f32 %v594_v46, %v532_v29  ;;  %v422_v29 = vadd.f32 %v1139_v41, %v421_v4  ;;  %v625_v38 = vadd.f32 %v624_v25, %v557_v6  ;;  %v490_v25 = vadd.f32 %v1139_v41, %v1199_v36  ;;  %v655_v36 = vld [vmem:[%s1367_s3 + $0x8] sm:$0xff] }
 0x123   :  { %v596_v1 = vadd.f32 %v595_v55, %v533_v22  ;;  %v425_v22 = vadd.f32 %v1139_v41, %v1142_v43  ;;  %v541_v55 = vmax.f32 %v422_v29, 0.0  ;;  %v427_v43 = vadd.f32 %v1139_v41, %v1147_v50 }
 0x124   :  { %v464_v5 = vpop.f32.mrf.mxu2  ;;  %v477_v50 = vadd.f32 %v1139_v41, %v1162_v2  ;;  %v492_v29 = vadd.f32 %v1139_v41, %v1210_v45  ;;  %v497_v45 = vadd.f32 %v1139_v41, %v1238_v34 }
 0x125   :  { %v597_v11 = vadd.f32 %v596_v1, %v534_v57  ;;  %v465_v17 = vadd.f32 %v1139_v41, %v464_v5  ;;  %v661_v57 = vld [vmem:[%s1367_s3 + $0x38] sm:$0xff]  ;;  %v542_v1 = vmax.f32 %v425_v22, 0.0  ;;  %v543_v14 = vmax.f32 %v427_v43, 0.0 }
 0x126   :  { %687 = vmatpush.msrb.mxu1 %v661_v57  ;;  %v563_v2 = vmax.f32 %v477_v50, 0.0  ;;  %v569_v22 = vmax.f32 %v492_v29, 0.0  ;;  %v505_v43 = vadd.f32 %v1139_v41, %v1294_v23 }
 0x127   :  { %v598_v61 = vadd.f32 %v597_v11, %v535_v54  ;;  %v558_v20 = vmax.f32 %v465_v17, 0.0  ;;  %v430_v54 = vadd.f32 %v1139_v41, %v1152_v56  ;;  %v562_v11 = vmax.f32 %v475_v51, 0.0 }
 0x128   :  { %688 = vmatpush.msrb.mxu1 %v660_v0  ;;  %v480_v56 = vadd.f32 %v1139_v41, %v1166_v8  ;;  %v545_v17 = vmax.f32 %v432_v10, 0.0  ;;  %v487_v8 = vadd.f32 %v1139_v41, %v1187_v30  ;;  %v656_v30 = vld [vmem:[%s1367_s3 + $0x10] sm:$0xff] }
 0x129   :  { %v599_v19 = vadd.f32 %v598_v61, %v536_v24  ;;  %v626_v49 = vadd.f32 %v625_v38, %v558_v20  ;;  %v544_v12 = vmax.f32 %v430_v54, 0.0 }
 0x12a   :  { %689 = vmatpush.msrb.mxu1 %v659_v58  ;;  %v567_v20 = vmax.f32 %v487_v8, 0.0 }
 0x12b   :  { %v600_v13 = vadd.f32 %v599_v19, %v537_v48  ;;  %v506_v48 = vpop.f32.mrf.mxu3  ;;  %v565_v19 = vmax.f32 %v482_v52, 0.0 }
 0x12c   :  { %v466_v31 = vpop.f32.mrf.mxu2  ;;  %690 = vmatpush.msrb.mxu1 %v658_v18 }
 0x12d   :  { %v601_v37 = vadd.f32 %v600_v13, %v538_v28  ;;  %v467_v46 = vadd.f32 %v1139_v41, %v466_v31  ;;  %v564_v28 = vmax.f32 %v480_v56, 0.0  ;;  %v568_v31 = vmax.f32 %v490_v25, 0.0 }
 0x12e   :  { %691 = vmatpush.msrb.mxu1 %v657_v26 }
 0x12f   :  { %v602_v47 = vadd.f32 %v601_v37, %v539_v21  ;;  %v559_v42 = vmax.f32 %v467_v46, 0.0  ;;  %v566_v21 = vmax.f32 %v485_v63, 0.0  ;;  %v495_v37 = vadd.f32 %v1139_v41, %v1220_v60  ;;  %v654_v46 = vld [vmem:[%s1367_s3] sm:$0xff] }
 0x130   :  { %692 = vmatpush.msrb.mxu1 %v656_v30  ;;  %v571_v60 = vmax.f32 %v497_v45, 0.0  ;;  %v954_v63 = vld [vmem:[%s1368_s4] ss:$0 sm:$0xff]  ;;  %s719_s4 = sshll.u32 %s1369_s5, 4  ;;  %s720_s4 = int_to_ptr.hbm [resolvable:$true] %s719_s4 }
 0x131   :  { %v603_v59 = vadd.f32 %v602_v47, %v540_v39  ;;  %v627_v62 = vadd.f32 %v626_v49, %v559_v42  ;;  %v570_v47 = vmax.f32 %v495_v37, 0.0  ;;  %v500_v49 = vadd.f32 %v1139_v41, %v1257_v16 }
 0x132   :  { %693 = vmatpush.msrb.mxu1 %v655_v36 }
 0x133   :  { %v628_v33 = vadd.f32 %v627_v62, %v560_v27  ;;  %v604_v5 = vadd.f32 %v603_v59, %v541_v55  ;;  %v509_v39 = vpop.f32.mrf.mxu3  ;;  %v502_v55 = vadd.f32 %v1139_v41, %v1280_v7  ;;  %v572_v57 = vmax.f32 %v500_v49, 0.0 }
 0x134   :  { %694 = vmatpush.msrb.mxu1 %v654_v46  ;;  %v507_v59 = vadd.f32 %v1139_v41, %v506_v48  ;;  %v510_v54 = vadd.f32 %v1139_v41, %v509_v39 }
 0x135   :  { %v629_v40 = vadd.f32 %v628_v33, %v561_v3  ;;  %v605_v24 = vadd.f32 %v604_v5, %v542_v1  ;;  %v573_v51 = vmax.f32 %v502_v55, 0.0  ;;  %v574_v1 = vmax.f32 %v505_v43, 0.0 }
 0x136   :  { %v575_v50 = vmax.f32 %v507_v59, 0.0  ;;  %v576_v58 = vmax.f32 %v510_v54, 0.0 }
 0x137   :  { %v630_v15 = vadd.f32 %v629_v40, %v562_v11  ;;  %v606_v61 = vadd.f32 %v605_v24, %v543_v14 }
 0x139   :  { %v631_v4 = vadd.f32 %v630_v15, %v563_v2  ;;  %v607_v9 = vadd.f32 %v606_v61, %v544_v12 }
 0x13b   :  { %v632_v6 = vadd.f32 %v631_v4, %v564_v28  ;;  %v608_v32 = vadd.f32 %v607_v9, %v545_v17  ;;  %v511_v0 = vpop.f32.mrf.mxu3 }
 0x13c   :  { %v512_v7 = vadd.f32 %v1139_v41, %v511_v0 }
 0x13d   :  { %v633_v13 = vadd.f32 %v632_v6, %v565_v19  ;;  %v609_v62 = vrot.slane %v608_v32, 4 }
 0x13e   :  { %v577_v23 = vmax.f32 %v512_v7, 0.0 }
 0x13f   :  { %v634_v53 = vadd.f32 %v633_v13, %v566_v21  ;;  %v610_v33 = vadd.f32 %v609_v62, %v608_v32 }
 0x141   :  { %v635_v38 = vadd.f32 %v634_v53, %v567_v20  ;;  %v611_v10 = vrot.slane %v610_v33, 2 }
 0x143   :  { %v636_v35 = vadd.f32 %v635_v38, %v568_v31  ;;  %v612_v40 = vadd.f32 %v611_v10, %v610_v33 }
 0x145   :  { %v637_v42 = vadd.f32 %v636_v35, %v569_v22  ;;  %v613_v2 = vrot.slane %v612_v40, 1 }
 0x147   :  { %v638_v44 = vadd.f32 %v637_v42, %v570_v47  ;;  %v614_v15 = vadd.f32 %v613_v2, %v612_v40 }
 0x149   :  { %v639_v27 = vadd.f32 %v638_v44, %v571_v60  ;;  %v652_v48 = vmul.f32 0.00390625, %v614_v15 }
 0x14b   :  { %v640_v34 = vadd.f32 %v639_v27, %v572_v57 }
 0x14d   :  { %v641_v16 = vadd.f32 %v640_v34, %v573_v51 }
 0x14f   :  { %v642_v3 = vadd.f32 %v641_v16, %v574_v1 }
 0x151   :  { %v643_v5 = vadd.f32 %v642_v3, %v575_v50 }
 0x153   :  { %v644_v14 = vadd.f32 %v643_v5, %v576_v58 }
 0x155   :  { %v645_v11 = vadd.f32 %v644_v14, %v577_v23 }
 0x157   :  { %v646_v56 = vrot.slane %v645_v11, 4 }
 0x159   :  { %v647_v24 = vadd.f32 %v646_v56, %v645_v11 }
 0x15b   :  { %v648_v12 = vrot.slane %v647_v24, 2 }
 0x15d   :  { %v649_v52 = vadd.f32 %v648_v12, %v647_v24 }
 0x15f   :  { %v650_v61 = vrot.slane %v649_v52, 1 }
 0x161   :  { %v651_v17 = vadd.f32 %v650_v61, %v649_v52 }
 0x163   :  { %v653_v28 = vmul.f32 0.00390625, %v651_v17 }
 0x165   :  { %v677_v41 = vsel %vm676_vm0, %v653_v28, %v652_v48 }
 0x166   :  { %695 = vmatmul.f32.vlgmr.msrb.gmra.mxu1 %v677_v41 }
 0x1e3   :  { %v696_v4 = vpop.f32.mrf.mxu1 }
 0x1e4   :  { %v697_v9 = vadd.f32 %v954_v63, %v696_v4 }
 0x1e6   :  { %v700_v19 = vsel %vm699_vm1, %v697_v9, -inf }
 0x1e7   :  { %701 = vmax.xlane.f32.xlu0 %v700_v19 }
 0x25a   :  { %v702_v8 = vpop.xlane.xlu0 %701 }
 0x25b   :  { %v703_v6 = vsub.f32 %v697_v9, %v702_v8 }
 0x25d   :  { %v704_v32 = vmul.f32 1.442695, %v703_v6 }
 0x25f   :  { %955 = vpow2.f32 %v704_v32 }
 0x265   :  { %v956_v18 = vpop.eup %955 }
 0x266   :  { %v706_v21 = vsel %vm699_vm1, %v956_v18, 0.0 }
 0x267   :  { %707 = vadd.xlane.f32.xlu0 %v706_v21 }
 0x2da   :  { %v708_v25 = vpop.xlane.xlu0 %707 }
 0x2db   :  { %957 = vrcp.f32 %v708_v25 }
 0x2e1   :  { %v958_v13 = vpop.eup %957 }
 0x2e2   :  { %v710_v26 = vmul.f32 %v958_v13, %v956_v18 }
 0x2e4   :  { %711 = vst [vmem:[#allocation2] sm:$0x3] %v710_v26 }
 0x2e5   :  { %722 = dma.vmem_to_hbm [thread:$0]  %s718_s26, 32, %s720_s4, [#allocation3]  }
 0x2e6   :  { %983 = dma.done.wait [#allocation3], 32  }
 0x2e7   :  { %984 = vsyncadd [#allocation3], 4294967264 }
 0x2e8   :  { %727 = vsyncpa [#allocation3], 1 }

</bundles_post_ra>
